<compile_context>
chip_gen: v7x
topology: tpu7x:2x2x1
jax: 0.10.0
libtpu: 0.0.40
codegen_flags: <defaults>
</compile_context>

<pallas_src>
import functools

import jax
import jax.numpy as jnp
from jax.experimental import pallas as pl
from jax.experimental.pallas import tpu as pltpu


def _triple_loss_kernel(x_ref, t_ref, inter_ref, card_ref, focal_ref, *,
                        focal_gamma: float, focal_alpha: float, sub_rows: int):
    # x_ref     : [C, TH, W]    logits tile (native dtype, upcast per sub-block)
    # t_ref     : [TH, W]       integer class ids
    # inter_ref : [C, SUB, W]   per-(batch, chunk) dice intersection partials
    # card_ref  : [C, SUB, W]   per-(batch, chunk) dice cardinality partials
    # focal_ref : [SUB, W]      per-(batch, chunk) focal partial sums
    h = pl.program_id(2)
    C, TH, W = x_ref.shape
    n_sub = TH // sub_rows

    inter_parts = [jnp.zeros((sub_rows, W), jnp.float32) for _ in range(C)]
    card_parts = [jnp.zeros((sub_rows, W), jnp.float32) for _ in range(C)]
    focal_part = jnp.zeros((sub_rows, W), jnp.float32)

    # Static (fully unrolled) loop over vreg-sized row sub-blocks so that no
    # full-tile f32 intermediate (probas, exp, masks, ...) ever hits VMEM.
    for s in range(n_sub):
        r0 = s * sub_rows
        x = x_ref[:, pl.ds(r0, sub_rows), :].astype(jnp.float32)   # [C, SUB, W]
        t = t_ref[pl.ds(r0, sub_rows), :]                          # [SUB, W]

        # Softmax over the class (leading) axis -> pure VPU folds, no XLU.
        m = jnp.max(x, axis=0)                                     # [SUB, W]
        e = jnp.exp(x - m[None, :, :])                             # [C, SUB, W]
        den = jnp.sum(e, axis=0)                                   # [SUB, W]
        # EUP approximate reciprocal + one Newton step (~f32-accurate).
        r = pl.reciprocal(den, approx=True)
        inv = r * (2.0 - den * r)
        lse = m + jnp.log(den)                                     # logsumexp

        p_at_t = jnp.zeros((sub_rows, W), jnp.float32)
        logit_at_t = jnp.zeros((sub_rows, W), jnp.float32)
        for c in range(C):
            is_c = t == c                                          # bool mask
            p_c = e[c] * inv                                       # class-c prob
            pm = jnp.where(is_c, p_c, 0.0)
            p_at_t = p_at_t + pm
            logit_at_t = jnp.where(is_c, x[c], logit_at_t)
            inter_parts[c] = inter_parts[c] + pm
            card_parts[c] = card_parts[c] + p_c + jnp.where(is_c, 1.0, 0.0)

        # Focal: alpha * (1 - p_t)^gamma * (-log p_t)
        ce = lse - logit_at_t                                      # -log p_t
        one_m_pt = 1.0 - p_at_t
        if float(focal_gamma) == 2.0:
            mod = one_m_pt * one_m_pt
        else:
            mod = jnp.power(jnp.maximum(one_m_pt, 0.0), focal_gamma)
        focal_part = focal_part + focal_alpha * mod * ce

    @pl.when(h == 0)
    def _():
        inter_ref[...] = jnp.zeros_like(inter_ref)
        card_ref[...] = jnp.zeros_like(card_ref)
        focal_ref[...] = jnp.zeros_like(focal_ref)

    inter_ref[...] += jnp.stack(inter_parts, axis=0)
    card_ref[...] += jnp.stack(card_parts, axis=0)
    focal_ref[...] += focal_part


def _vmem_budget():
    """Generation-aware VMEM limits (64 MiB on v7x vs 128 MiB on v5e/v6e)."""
    cap = 128 * 1024 * 1024
    try:
        cap = int(getattr(pltpu.get_tpu_info(), "vmem_capacity_bytes", cap))
    except Exception:
        pass
    limit = min(cap // 2, 64 * 1024 * 1024)   # scoped limit, ample headroom
    work = limit // 2                          # budget for auto tile-height
    return limit, work


def _pick_tile_h(H, C, W, in_itemsize, t_itemsize, sub, budget_bytes):
    """Largest TH (multiple of `sub`, dividing H) fitting the VMEM budget."""
    per_row = 2 * W * (C * in_itemsize + t_itemsize)          # 2x-buffered inputs
    fixed = (2 * (2 * C + 1) + 3 * C + 10) * sub * W * 4       # accumulators + temps
    avail = max(budget_bytes - fixed, per_row * sub)
    th = int(avail // per_row)
    th = max(sub, (th // sub) * sub)
    th = min(th, H)
    while H % th != 0:
        th -= sub
    return th


def triple_loss(logits, targets, alpha=0.75, beta=0.25, gamma=0.25,
                smooth=1.0, focal_gamma=2.0, focal_alpha=0.25,
                tile_h=None, n_h_chunks=None):
    """logits: [B, C, H, W] float (f32 or bf16); targets: [B, H, W] int."""
    B, C, H, W = logits.shape
    in_item = jnp.dtype(logits.dtype).itemsize
    # Sub-block / accumulator fold height = one native sublane tile of the input.
    sub = 8 * max(1, 4 // in_item)
    if H % sub != 0:
        # TODO(synk): pad H (and mask padded rows in the focal term) for awkward H.
        raise ValueError(f"H={H} must be a multiple of {sub} for {logits.dtype} inputs")

    # Keep targets in their narrow native dtype (HBM bytes matter on v5e) when
    # compatible with the sub-block row granularity; otherwise cast once.
    t_dtype = jnp.dtype(targets.dtype)
    if (jnp.issubdtype(t_dtype, jnp.integer) and t_dtype.itemsize <= 4
            and sub % (8 * (4 // t_dtype.itemsize)) == 0):
        t = targets
    else:
        t = targets.astype(jnp.int32)
    t_item = jnp.dtype(t.dtype).itemsize

    vmem_limit, work_budget = _vmem_budget()
    if tile_h is None:
        TH = _pick_tile_h(H, C, W, in_item, t_item, sub, work_budget)
    else:
        TH = int(tile_h)
        if H % TH != 0 or TH % sub != 0:
            raise ValueError(f"tile_h={TH} must divide H={H} and be a multiple of {sub}")

    n_h_tiles = H // TH
    if n_h_chunks is None:
        # Megacore coverage on v7x when the batch axis alone can't fill both cores.
        n_h_chunks = 2 if (B == 1 and n_h_tiles >= 2 and n_h_tiles % 2 == 0) else 1
    if n_h_tiles % n_h_chunks != 0:
        raise ValueError("n_h_chunks must divide H // tile_h")
    tiles_per_chunk = n_h_tiles // n_h_chunks

    kernel = functools.partial(_triple_loss_kernel,
                               focal_gamma=float(focal_gamma),
                               focal_alpha=float(focal_alpha),
                               sub_rows=sub)

    inter, card, focal = pl.pallas_call(
        kernel,
        out_shape=(
            jax.ShapeDtypeStruct((B, n_h_chunks, C, sub, W), jnp.float32),
            jax.ShapeDtypeStruct((B, n_h_chunks, C, sub, W), jnp.float32),
            jax.ShapeDtypeStruct((B, n_h_chunks, sub, W), jnp.float32),
        ),
        grid_spec=pltpu.PrefetchScalarGridSpec(
            num_scalar_prefetch=0,
            grid=(B, n_h_chunks, tiles_per_chunk),
            in_specs=[
                # Native NCHW layout; batch dim squeezed out of the kernel view.
                # (If a profile shows exposed DMA on v5e / f32 inputs, add
                #  pipeline_mode=pl.Buffered(3) on this spec.)
                pl.BlockSpec((None, C, TH, W),
                             lambda b, n, h: (b, 0, n * tiles_per_chunk + h, 0)),
                pl.BlockSpec((None, TH, W),
                             lambda b, n, h: (b, n * tiles_per_chunk + h, 0)),
            ],
            out_specs=[
                # Per-(batch, chunk) accumulators, resident across the arbitrary H axis.
                pl.BlockSpec((None, None, C, sub, W), lambda b, n, h: (b, n, 0, 0, 0)),
                pl.BlockSpec((None, None, C, sub, W), lambda b, n, h: (b, n, 0, 0, 0)),
                pl.BlockSpec((None, None, sub, W), lambda b, n, h: (b, n, 0, 0)),
            ],
        ),
        compiler_params=pltpu.CompilerParams(
            dimension_semantics=("parallel", "parallel", "arbitrary"),
            vmem_limit_bytes=int(vmem_limit),
        ),
    )(logits, t)

    # Tiny final reductions / blend in plain JAX: fold batch, H-chunks and the
    # deferred SUB sublane axis here (keeps the kernel free of XLU reductions
    # and lets the parallel grid axes combine without cross-core traffic).
    inter_cw = jnp.sum(inter, axis=(0, 1, 3))                  # [C, W]
    card_cw = jnp.sum(card, axis=(0, 1, 3))                    # [C, W]
    dice = jnp.mean((2.0 * inter_cw + smooth) / (card_cw + smooth))
    dice_loss = 1.0 - dice
    focal_loss = jnp.sum(focal) / float(B * H * W)

    # TODO(synk): the gamma * SSIM(argmax(softmax(inputs)), targets) term is
    # omitted -- the SSIM class is not defined in the provided spec.
    return alpha * focal_loss + beta * dice_loss


def _reference(logits, targets, alpha=0.75, beta=0.25, smooth=1.0,
               focal_gamma=2.0, focal_alpha=0.25):
    """Pure-JAX reference matching the PyTorch Dice + Focal forward exactly."""
    B, C, H, W = logits.shape
    x = logits.astype(jnp.float32)
    onehot = jnp.transpose(jax.nn.one_hot(targets, C, dtype=jnp.float32),
                           (0, 3, 1, 2))               # [B, C, H, W]
    probas = jax.nn.softmax(x, axis=1)
    # Dice with dims = (0, 2)  (targets.ndimension() == 3 in the reference)
    inter = jnp.sum(probas * onehot, axis=(0, 2))      # [C, W]
    card = jnp.sum(probas + onehot, axis=(0, 2))       # [C, W]
    dice = jnp.mean((2.0 * inter + smooth) / (card + smooth))
    dice_loss = 1.0 - dice
    # Focal (gamma=2, alpha=0.25, no class weights)
    logp = jax.nn.log_softmax(x, axis=1)
    ce = -jnp.sum(logp * onehot, axis=1)               # [B, H, W]
    pt = jnp.exp(-ce)
    focal = jnp.mean(focal_alpha * (1.0 - pt) ** focal_gamma * ce)
    return alpha * focal + beta * dice_loss


if __name__ == "__main__":
    key = jax.random.PRNGKey(0)
    k_logits, k_targets, k_logits1, k_targets1 = jax.random.split(key, 4)

    # Case 1: B=2 -- batch-parallel path, 2 H-tiles accumulated per batch.
    B, C, H, W = 2, 4, 16, 16
    logits = jax.random.normal(k_logits, (B, C, H, W), dtype=jnp.float32)
    targets = jax.random.randint(k_targets, (B, H, W), 0, C, dtype=jnp.int32)
    loss = jax.block_until_ready(
        triple_loss(logits, targets, alpha=0.75, beta=0.25, gamma=0.25, tile_h=8))
    ref = _reference(logits, targets, alpha=0.75, beta=0.25)
    assert jnp.allclose(loss, ref, rtol=1e-5, atol=1e-5), (loss, ref)

    # Case 2: B=1 -- exercises the H-chunk "parallel" axis (v7x megacore path).
    logits1 = jax.random.normal(k_logits1, (1, C, H, W), dtype=jnp.float32)
    targets1 = jax.random.randint(k_targets1, (1, H, W), 0, C, dtype=jnp.int32)
    loss1 = jax.block_until_ready(
        triple_loss(logits1, targets1, alpha=0.75, beta=0.25, gamma=0.25, tile_h=8))
    ref1 = _reference(logits1, targets1, alpha=0.75, beta=0.25)
    assert jnp.allclose(loss1, ref1, rtol=1e-5, atol=1e-5), (loss1, ref1)

    print("KERNEL_OK")
</pallas_src>

<mosaic_0001>
module attributes {stable_mosaic.version = 11 : i64} {
  func.func @_triple_loss_kernel(%arg0: i32, %arg1: i32, %arg2: i32, %arg3: memref<1x4x8x16xf32, #tpu.memory_space<vmem>>, %arg4: memref<1x8x16xi32, #tpu.memory_space<vmem>>, %arg5: memref<1x1x4x8x16xf32, #tpu.memory_space<vmem>>, %arg6: memref<1x1x4x8x16xf32, #tpu.memory_space<vmem>>, %arg7: memref<1x1x8x16xf32, #tpu.memory_space<vmem>>) attributes {dimension_semantics = [#tpu.dimension_semantics<parallel>, #tpu.dimension_semantics<parallel>, #tpu.dimension_semantics<arbitrary>], iteration_bounds = array<i64: 2, 1, 2>, scalar_prefetch = 0 : i64, scratch_operands = 0 : i64, tpu.core_type = #tpu.core_type<tc>, window_params = [{transform_indices = @transform_0, window_bounds = array<i64: 1, 4, 8, 16>}, {transform_indices = @transform_1, window_bounds = array<i64: 1, 8, 16>}, {transform_indices = @transform_2, window_bounds = array<i64: 1, 1, 4, 8, 16>}, {transform_indices = @transform_3, window_bounds = array<i64: 1, 1, 4, 8, 16>}, {transform_indices = @transform_4, window_bounds = array<i64: 1, 1, 8, 16>}]} {
    %cst = arith.constant 0.000000e+00 : f32
    %0 = vector.broadcast %cst : f32 to vector<8x16xf32>
    %cst_0 = arith.constant 0.000000e+00 : f32
    %1 = vector.broadcast %cst_0 : f32 to vector<8x16xf32>
    %cst_1 = arith.constant 0.000000e+00 : f32
    %2 = vector.broadcast %cst_1 : f32 to vector<8x16xf32>
    %cst_2 = arith.constant 0.000000e+00 : f32
    %3 = vector.broadcast %cst_2 : f32 to vector<8x16xf32>
    %cst_3 = arith.constant 0.000000e+00 : f32
    %4 = vector.broadcast %cst_3 : f32 to vector<8x16xf32>
    %cst_4 = arith.constant 0.000000e+00 : f32
    %5 = vector.broadcast %cst_4 : f32 to vector<8x16xf32>
    %cst_5 = arith.constant 0.000000e+00 : f32
    %6 = vector.broadcast %cst_5 : f32 to vector<8x16xf32>
    %cst_6 = arith.constant 0.000000e+00 : f32
    %7 = vector.broadcast %cst_6 : f32 to vector<8x16xf32>
    %cst_7 = arith.constant 0.000000e+00 : f32
    %8 = vector.broadcast %cst_7 : f32 to vector<8x16xf32>
    %c0 = arith.constant 0 : index
    %c0_8 = arith.constant 0 : index
    %c0_9 = arith.constant 0 : index
    %c0_10 = arith.constant 0 : index
    %9 = vector.load %arg3[%c0, %c0_8, %c0_9, %c0_10] : memref<1x4x8x16xf32, #tpu.memory_space<vmem>>, vector<1x4x8x16xf32>
    %10 = vector.shape_cast %9 : vector<1x4x8x16xf32> to vector<4x8x16xf32>
    %c0_11 = arith.constant 0 : index
    %c0_12 = arith.constant 0 : index
    %c0_13 = arith.constant 0 : index
    %11 = vector.load %arg4[%c0_11, %c0_12, %c0_13] : memref<1x8x16xi32, #tpu.memory_space<vmem>>, vector<1x8x16xi32>
    %12 = vector.shape_cast %11 : vector<1x8x16xi32> to vector<8x16xi32>
    %cst_14 = arith.constant dense<0xFF800000> : vector<8x16xf32>
    %13 = vector.multi_reduction <maximumf>, %10, %cst_14 [0] : vector<4x8x16xf32> to vector<8x16xf32>
    %14 = vector.shape_cast %13 : vector<8x16xf32> to vector<1x8x16xf32>
    %15 = vector.broadcast %14 : vector<1x8x16xf32> to vector<4x8x16xf32>
    %16 = arith.subf %10, %15 : vector<4x8x16xf32>
    %17 = math.exp %16 : vector<4x8x16xf32>
    %cst_15 = arith.constant dense<0.000000e+00> : vector<8x16xf32>
    %18 = vector.multi_reduction <add>, %17, %cst_15 [0] : vector<4x8x16xf32> to vector<8x16xf32>
    %19 = tpu.reciprocal %18 {approx = true} : vector<8x16xf32> -> vector<8x16xf32>
    %20 = arith.mulf %18, %19 : vector<8x16xf32>
    %cst_16 = arith.constant 2.000000e+00 : f32
    %21 = vector.broadcast %cst_16 : f32 to vector<8x16xf32>
    %22 = arith.subf %21, %20 : vector<8x16xf32>
    %23 = arith.mulf %19, %22 : vector<8x16xf32>
    %24 = math.log %18 : vector<8x16xf32>
    %25 = arith.addf %13, %24 : vector<8x16xf32>
    %cst_17 = arith.constant 0.000000e+00 : f32
    %26 = vector.broadcast %cst_17 : f32 to vector<8x16xf32>
    %cst_18 = arith.constant 0.000000e+00 : f32
    %27 = vector.broadcast %cst_18 : f32 to vector<8x16xf32>
    %c0_i32 = arith.constant 0 : i32
    %28 = vector.broadcast %c0_i32 : i32 to vector<8x16xi32>
    %29 = arith.cmpi eq, %12, %28 : vector<8x16xi32>
    %30 = vector.extract_strided_slice %17 {offsets = [0, 0, 0], sizes = [1, 8, 16], strides = [1, 1, 1]} : vector<4x8x16xf32> to vector<1x8x16xf32>
    %31 = vector.shape_cast %30 : vector<1x8x16xf32> to vector<8x16xf32>
    %32 = arith.mulf %31, %23 : vector<8x16xf32>
    %cst_19 = arith.constant 0.000000e+00 : f32
    %33 = vector.broadcast %cst_19 : f32 to vector<8x16xf32>
    %34 = arith.select %29, %32, %33 : vector<8x16xi1>, vector<8x16xf32>
    %35 = arith.addf %26, %34 : vector<8x16xf32>
    %36 = vector.extract_strided_slice %10 {offsets = [0, 0, 0], sizes = [1, 8, 16], strides = [1, 1, 1]} : vector<4x8x16xf32> to vector<1x8x16xf32>
    %37 = vector.shape_cast %36 : vector<1x8x16xf32> to vector<8x16xf32>
    %38 = arith.select %29, %37, %27 : vector<8x16xi1>, vector<8x16xf32>
    %39 = arith.addf %0, %34 : vector<8x16xf32>
    %40 = arith.addf %4, %32 : vector<8x16xf32>
    %cst_20 = arith.constant 1.000000e+00 : f32
    %cst_21 = arith.constant 0.000000e+00 : f32
    %41 = vector.broadcast %cst_20 : f32 to vector<8x16xf32>
    %42 = vector.broadcast %cst_21 : f32 to vector<8x16xf32>
    %43 = arith.select %29, %41, %42 : vector<8x16xi1>, vector<8x16xf32>
    %44 = arith.addf %40, %43 : vector<8x16xf32>
    %c1_i32 = arith.constant 1 : i32
    %45 = vector.broadcast %c1_i32 : i32 to vector<8x16xi32>
    %46 = arith.cmpi eq, %12, %45 : vector<8x16xi32>
    %47 = vector.extract_strided_slice %17 {offsets = [1, 0, 0], sizes = [1, 8, 16], strides = [1, 1, 1]} : vector<4x8x16xf32> to vector<1x8x16xf32>
    %48 = vector.shape_cast %47 : vector<1x8x16xf32> to vector<8x16xf32>
    %49 = arith.mulf %48, %23 : vector<8x16xf32>
    %cst_22 = arith.constant 0.000000e+00 : f32
    %50 = vector.broadcast %cst_22 : f32 to vector<8x16xf32>
    %51 = arith.select %46, %49, %50 : vector<8x16xi1>, vector<8x16xf32>
    %52 = arith.addf %35, %51 : vector<8x16xf32>
    %53 = vector.extract_strided_slice %10 {offsets = [1, 0, 0], sizes = [1, 8, 16], strides = [1, 1, 1]} : vector<4x8x16xf32> to vector<1x8x16xf32>
    %54 = vector.shape_cast %53 : vector<1x8x16xf32> to vector<8x16xf32>
    %55 = arith.select %46, %54, %38 : vector<8x16xi1>, vector<8x16xf32>
    %56 = arith.addf %1, %51 : vector<8x16xf32>
    %57 = arith.addf %5, %49 : vector<8x16xf32>
    %cst_23 = arith.constant 1.000000e+00 : f32
    %cst_24 = arith.constant 0.000000e+00 : f32
    %58 = vector.broadcast %cst_23 : f32 to vector<8x16xf32>
    %59 = vector.broadcast %cst_24 : f32 to vector<8x16xf32>
    %60 = arith.select %46, %58, %59 : vector<8x16xi1>, vector<8x16xf32>
    %61 = arith.addf %57, %60 : vector<8x16xf32>
    %c2_i32 = arith.constant 2 : i32
    %62 = vector.broadcast %c2_i32 : i32 to vector<8x16xi32>
    %63 = arith.cmpi eq, %12, %62 : vector<8x16xi32>
    %64 = vector.extract_strided_slice %17 {offsets = [2, 0, 0], sizes = [1, 8, 16], strides = [1, 1, 1]} : vector<4x8x16xf32> to vector<1x8x16xf32>
    %65 = vector.shape_cast %64 : vector<1x8x16xf32> to vector<8x16xf32>
    %66 = arith.mulf %65, %23 : vector<8x16xf32>
    %cst_25 = arith.constant 0.000000e+00 : f32
    %67 = vector.broadcast %cst_25 : f32 to vector<8x16xf32>
    %68 = arith.select %63, %66, %67 : vector<8x16xi1>, vector<8x16xf32>
    %69 = arith.addf %52, %68 : vector<8x16xf32>
    %70 = vector.extract_strided_slice %10 {offsets = [2, 0, 0], sizes = [1, 8, 16], strides = [1, 1, 1]} : vector<4x8x16xf32> to vector<1x8x16xf32>
    %71 = vector.shape_cast %70 : vector<1x8x16xf32> to vector<8x16xf32>
    %72 = arith.select %63, %71, %55 : vector<8x16xi1>, vector<8x16xf32>
    %73 = arith.addf %2, %68 : vector<8x16xf32>
    %74 = arith.addf %6, %66 : vector<8x16xf32>
    %cst_26 = arith.constant 1.000000e+00 : f32
    %cst_27 = arith.constant 0.000000e+00 : f32
    %75 = vector.broadcast %cst_26 : f32 to vector<8x16xf32>
    %76 = vector.broadcast %cst_27 : f32 to vector<8x16xf32>
    %77 = arith.select %63, %75, %76 : vector<8x16xi1>, vector<8x16xf32>
    %78 = arith.addf %74, %77 : vector<8x16xf32>
    %c3_i32 = arith.constant 3 : i32
    %79 = vector.broadcast %c3_i32 : i32 to vector<8x16xi32>
    %80 = arith.cmpi eq, %12, %79 : vector<8x16xi32>
    %81 = vector.extract_strided_slice %17 {offsets = [3, 0, 0], sizes = [1, 8, 16], strides = [1, 1, 1]} : vector<4x8x16xf32> to vector<1x8x16xf32>
    %82 = vector.shape_cast %81 : vector<1x8x16xf32> to vector<8x16xf32>
    %83 = arith.mulf %82, %23 : vector<8x16xf32>
    %cst_28 = arith.constant 0.000000e+00 : f32
    %84 = vector.broadcast %cst_28 : f32 to vector<8x16xf32>
    %85 = arith.select %80, %83, %84 : vector<8x16xi1>, vector<8x16xf32>
    %86 = arith.addf %69, %85 : vector<8x16xf32>
    %87 = vector.extract_strided_slice %10 {offsets = [3, 0, 0], sizes = [1, 8, 16], strides = [1, 1, 1]} : vector<4x8x16xf32> to vector<1x8x16xf32>
    %88 = vector.shape_cast %87 : vector<1x8x16xf32> to vector<8x16xf32>
    %89 = arith.select %80, %88, %72 : vector<8x16xi1>, vector<8x16xf32>
    %90 = arith.addf %3, %85 : vector<8x16xf32>
    %91 = arith.addf %7, %83 : vector<8x16xf32>
    %cst_29 = arith.constant 1.000000e+00 : f32
    %cst_30 = arith.constant 0.000000e+00 : f32
    %92 = vector.broadcast %cst_29 : f32 to vector<8x16xf32>
    %93 = vector.broadcast %cst_30 : f32 to vector<8x16xf32>
    %94 = arith.select %80, %92, %93 : vector<8x16xi1>, vector<8x16xf32>
    %95 = arith.addf %91, %94 : vector<8x16xf32>
    %96 = arith.subf %25, %89 : vector<8x16xf32>
    %cst_31 = arith.constant 1.000000e+00 : f32
    %97 = vector.broadcast %cst_31 : f32 to vector<8x16xf32>
    %98 = arith.subf %97, %86 : vector<8x16xf32>
    %99 = arith.mulf %98, %98 : vector<8x16xf32>
    %cst_32 = arith.constant 2.500000e-01 : f32
    %100 = vector.broadcast %cst_32 : f32 to vector<8x16xf32>
    %101 = arith.mulf %100, %99 : vector<8x16xf32>
    %102 = arith.mulf %101, %96 : vector<8x16xf32>
    %103 = arith.addf %8, %102 : vector<8x16xf32>
    %c0_i32_33 = arith.constant 0 : i32
    %104 = arith.cmpi eq, %arg2, %c0_i32_33 : i32
    %105 = arith.extui %104 : i1 to i32
    %c0_i32_34 = arith.constant 0 : i32
    %106 = arith.cmpi ne, %105, %c0_i32_34 : i32
    scf.if %106 {
      %cst_63 = arith.constant 0.000000e+00 : f32
      %135 = vector.broadcast %cst_63 : f32 to vector<4x8x16xf32>
      %c0_64 = arith.constant 0 : index
      %c0_65 = arith.constant 0 : index
      %c0_66 = arith.constant 0 : index
      %c0_67 = arith.constant 0 : index
      %c0_68 = arith.constant 0 : index
      %136 = vector.load %arg5[%c0_64, %c0_65, %c0_66, %c0_67, %c0_68] : memref<1x1x4x8x16xf32, #tpu.memory_space<vmem>>, vector<1x1x4x8x16xf32>
      %137 = vector.shape_cast %136 : vector<1x1x4x8x16xf32> to vector<4x8x16xf32>
      %138 = vector.shape_cast %135 : vector<4x8x16xf32> to vector<1x1x4x8x16xf32>
      tpu.vector_store %arg5[%c0_64, %c0_65, %c0_66, %c0_67, %c0_68], %138 {strides = array<i32>} : memref<1x1x4x8x16xf32, #tpu.memory_space<vmem>>, vector<1x1x4x8x16xf32>,
      %cst_69 = arith.constant 0.000000e+00 : f32
      %139 = vector.broadcast %cst_69 : f32 to vector<4x8x16xf32>
      %c0_70 = arith.constant 0 : index
      %c0_71 = arith.constant 0 : index
      %c0_72 = arith.constant 0 : index
      %c0_73 = arith.constant 0 : index
      %c0_74 = arith.constant 0 : index
      %140 = vector.load %arg6[%c0_70, %c0_71, %c0_72, %c0_73, %c0_74] : memref<1x1x4x8x16xf32, #tpu.memory_space<vmem>>, vector<1x1x4x8x16xf32>
      %141 = vector.shape_cast %140 : vector<1x1x4x8x16xf32> to vector<4x8x16xf32>
      %142 = vector.shape_cast %139 : vector<4x8x16xf32> to vector<1x1x4x8x16xf32>
      tpu.vector_store %arg6[%c0_70, %c0_71, %c0_72, %c0_73, %c0_74], %142 {strides = array<i32>} : memref<1x1x4x8x16xf32, #tpu.memory_space<vmem>>, vector<1x1x4x8x16xf32>,
      %cst_75 = arith.constant 0.000000e+00 : f32
      %143 = vector.broadcast %cst_75 : f32 to vector<8x16xf32>
      %c0_76 = arith.constant 0 : index
      %c0_77 = arith.constant 0 : index
      %c0_78 = arith.constant 0 : index
      %c0_79 = arith.constant 0 : index
      %144 = vector.load %arg7[%c0_76, %c0_77, %c0_78, %c0_79] : memref<1x1x8x16xf32, #tpu.memory_space<vmem>>, vector<1x1x8x16xf32>
      %145 = vector.shape_cast %144 : vector<1x1x8x16xf32> to vector<8x16xf32>
      %146 = vector.shape_cast %143 : vector<8x16xf32> to vector<1x1x8x16xf32>
      tpu.vector_store %arg7[%c0_76, %c0_77, %c0_78, %c0_79], %146 {strides = array<i32>} : memref<1x1x8x16xf32, #tpu.memory_space<vmem>>, vector<1x1x8x16xf32>,
    } else {
    }
    %c0_35 = arith.constant 0 : index
    %c0_36 = arith.constant 0 : index
    %c0_37 = arith.constant 0 : index
    %c0_38 = arith.constant 0 : index
    %c0_39 = arith.constant 0 : index
    %107 = vector.load %arg5[%c0_35, %c0_36, %c0_37, %c0_38, %c0_39] : memref<1x1x4x8x16xf32, #tpu.memory_space<vmem>>, vector<1x1x4x8x16xf32>
    %108 = vector.shape_cast %107 : vector<1x1x4x8x16xf32> to vector<4x8x16xf32>
    %109 = vector.shape_cast %39 : vector<8x16xf32> to vector<1x8x16xf32>
    %110 = vector.shape_cast %56 : vector<8x16xf32> to vector<1x8x16xf32>
    %111 = vector.shape_cast %73 : vector<8x16xf32> to vector<1x8x16xf32>
    %112 = vector.shape_cast %90 : vector<8x16xf32> to vector<1x8x16xf32>
    %113 = tpu.concatenate %109, %110, %111, %112 in 0 : vector<1x8x16xf32>, vector<1x8x16xf32>, vector<1x8x16xf32>, vector<1x8x16xf32> -> vector<4x8x16xf32>
    %114 = arith.addf %108, %113 : vector<4x8x16xf32>
    %c0_40 = arith.constant 0 : index
    %c0_41 = arith.constant 0 : index
    %c0_42 = arith.constant 0 : index
    %c0_43 = arith.constant 0 : index
    %c0_44 = arith.constant 0 : index
    %115 = vector.load %arg5[%c0_40, %c0_41, %c0_42, %c0_43, %c0_44] : memref<1x1x4x8x16xf32, #tpu.memory_space<vmem>>, vector<1x1x4x8x16xf32>
    %116 = vector.shape_cast %115 : vector<1x1x4x8x16xf32> to vector<4x8x16xf32>
    %117 = vector.shape_cast %114 : vector<4x8x16xf32> to vector<1x1x4x8x16xf32>
    tpu.vector_store %arg5[%c0_40, %c0_41, %c0_42, %c0_43, %c0_44], %117 {strides = array<i32>} : memref<1x1x4x8x16xf32, #tpu.memory_space<vmem>>, vector<1x1x4x8x16xf32>,
    %c0_45 = arith.constant 0 : index
    %c0_46 = arith.constant 0 : index
    %c0_47 = arith.constant 0 : index
    %c0_48 = arith.constant 0 : index
    %c0_49 = arith.constant 0 : index
    %118 = vector.load %arg6[%c0_45, %c0_46, %c0_47, %c0_48, %c0_49] : memref<1x1x4x8x16xf32, #tpu.memory_space<vmem>>, vector<1x1x4x8x16xf32>
    %119 = vector.shape_cast %118 : vector<1x1x4x8x16xf32> to vector<4x8x16xf32>
    %120 = vector.shape_cast %44 : vector<8x16xf32> to vector<1x8x16xf32>
    %121 = vector.shape_cast %61 : vector<8x16xf32> to vector<1x8x16xf32>
    %122 = vector.shape_cast %78 : vector<8x16xf32> to vector<1x8x16xf32>
    %123 = vector.shape_cast %95 : vector<8x16xf32> to vector<1x8x16xf32>
    %124 = tpu.concatenate %120, %121, %122, %123 in 0 : vector<1x8x16xf32>, vector<1x8x16xf32>, vector<1x8x16xf32>, vector<1x8x16xf32> -> vector<4x8x16xf32>
    %125 = arith.addf %119, %124 : vector<4x8x16xf32>
    %c0_50 = arith.constant 0 : index
    %c0_51 = arith.constant 0 : index
    %c0_52 = arith.constant 0 : index
    %c0_53 = arith.constant 0 : index
    %c0_54 = arith.constant 0 : index
    %126 = vector.load %arg6[%c0_50, %c0_51, %c0_52, %c0_53, %c0_54] : memref<1x1x4x8x16xf32, #tpu.memory_space<vmem>>, vector<1x1x4x8x16xf32>
    %127 = vector.shape_cast %126 : vector<1x1x4x8x16xf32> to vector<4x8x16xf32>
    %128 = vector.shape_cast %125 : vector<4x8x16xf32> to vector<1x1x4x8x16xf32>
    tpu.vector_store %arg6[%c0_50, %c0_51, %c0_52, %c0_53, %c0_54], %128 {strides = array<i32>} : memref<1x1x4x8x16xf32, #tpu.memory_space<vmem>>, vector<1x1x4x8x16xf32>,
    %c0_55 = arith.constant 0 : index
    %c0_56 = arith.constant 0 : index
    %c0_57 = arith.constant 0 : index
    %c0_58 = arith.constant 0 : index
    %129 = vector.load %arg7[%c0_55, %c0_56, %c0_57, %c0_58] : memref<1x1x8x16xf32, #tpu.memory_space<vmem>>, vector<1x1x8x16xf32>
    %130 = vector.shape_cast %129 : vector<1x1x8x16xf32> to vector<8x16xf32>
    %131 = arith.addf %130, %103 : vector<8x16xf32>
    %c0_59 = arith.constant 0 : index
    %c0_60 = arith.constant 0 : index
    %c0_61 = arith.constant 0 : index
    %c0_62 = arith.constant 0 : index
    %132 = vector.load %arg7[%c0_59, %c0_60, %c0_61, %c0_62] : memref<1x1x8x16xf32, #tpu.memory_space<vmem>>, vector<1x1x8x16xf32>
    %133 = vector.shape_cast %132 : vector<1x1x8x16xf32> to vector<8x16xf32>
    %134 = vector.shape_cast %131 : vector<8x16xf32> to vector<1x1x8x16xf32>
    tpu.vector_store %arg7[%c0_59, %c0_60, %c0_61, %c0_62], %134 {strides = array<i32>} : memref<1x1x8x16xf32, #tpu.memory_space<vmem>>, vector<1x1x8x16xf32>,
    return
  }
  func.func @transform_0(%arg0: i32, %arg1: i32, %arg2: i32) -> (i32, i32, i32, i32) {
    %c2_i32 = arith.constant 2 : i32
    %0 = arith.muli %arg1, %c2_i32 : i32
    %1 = arith.addi %0, %arg2 : i32
    %c0_i32 = arith.constant 0 : i32
    %c0_i32_0 = arith.constant 0 : i32
    %c0_i32_1 = arith.constant 0 : i32
    return %arg0, %c0_i32, %1, %c0_i32_0 : i32, i32, i32, i32
  }
  func.func @transform_1(%arg0: i32, %arg1: i32, %arg2: i32) -> (i32, i32, i32) {
    %c2_i32 = arith.constant 2 : i32
    %0 = arith.muli %arg1, %c2_i32 : i32
    %1 = arith.addi %0, %arg2 : i32
    %c0_i32 = arith.constant 0 : i32
    %c0_i32_0 = arith.constant 0 : i32
    return %arg0, %1, %c0_i32 : i32, i32, i32
  }
  func.func @transform_2(%arg0: i32, %arg1: i32, %arg2: i32) -> (i32, i32, i32, i32, i32) {
    %c0_i32 = arith.constant 0 : i32
    %c0_i32_0 = arith.constant 0 : i32
    %c0_i32_1 = arith.constant 0 : i32
    %c0_i32_2 = arith.constant 0 : i32
    return %arg0, %arg1, %c0_i32, %c0_i32_0, %c0_i32_1 : i32, i32, i32, i32, i32
  }
  func.func @transform_3(%arg0: i32, %arg1: i32, %arg2: i32) -> (i32, i32, i32, i32, i32) {
    %c0_i32 = arith.constant 0 : i32
    %c0_i32_0 = arith.constant 0 : i32
    %c0_i32_1 = arith.constant 0 : i32
    %c0_i32_2 = arith.constant 0 : i32
    return %arg0, %arg1, %c0_i32, %c0_i32_0, %c0_i32_1 : i32, i32, i32, i32, i32
  }
  func.func @transform_4(%arg0: i32, %arg1: i32, %arg2: i32) -> (i32, i32, i32, i32) {
    %c0_i32 = arith.constant 0 : i32
    %c0_i32_0 = arith.constant 0 : i32
    %c0_i32_1 = arith.constant 0 : i32
    return %arg0, %arg1, %c0_i32, %c0_i32_0 : i32, i32, i32, i32
  }
}

</mosaic_0001>

<bundles_post_ra>
// kernel: tpu_custom_call.1
= control target key start
LH: loop header
LB: loop body
LE: loop exit
PB: predicated region body
PF: predicated region fallthrough
CT: control target
= control target key end

     0   :  { %s1563_s0 = inlined_call_operand.hbm [shape: f32[2,4,16,16], index: 0, kind: input, shape index: {}]   ;;  %s1564_s1 = inlined_call_operand.hbm [shape: s32[2,16,16], index: 1, kind: input, shape index: {}]   ;;  %s1565_s2 = inlined_call_operand.hbm [shape: f32[2,1,4,8,16], index: 2, kind: output, shape index: {0}]   ;;  %s1566_s3 = inlined_call_operand.hbm [shape: f32[2,1,4,8,16], index: 3, kind: output, shape index: {1}]   ;;  %s1567_s4 = inlined_call_operand.hbm [shape: f32[2,1,8,16], index: 4, kind: output, shape index: {2}]  }
   0x1   :  { %1579 = sst [smem:[#allocation23_spill]] %s1563_s0 }
   0x2   :  { %1580 = sst [smem:[#allocation24_spill]] %s1565_s2 }
   0x3   :  { %1581 = sst [smem:[#allocation25_spill]] %s1567_s4 }
   0x4   :  { %10 = vsyncpa [#allocation3], 0 }
   0x5   :  { %12 = vsyncpa [#allocation3 + $0x1], 0 }
   0x6   :  { %13 = vsyncpa [#allocation6], 0 }
   0x7   :  { %15 = vsyncpa [#allocation6 + $0x1], 0 }
   0x8   :  { %16 = vsyncpa [#allocation4], 0 }
   0x9   :  { %18 = vsyncpa [#allocation4 + $0x1], 0 }
   0xa   :  { %19 = vsyncpa [#allocation9], 0 }
   0xb   :  { %21 = vsyncpa [#allocation9 + $0x1], 0  ;;  %s1133_s15 = smov 0   ;;  %s1135_s16 = smov 0  }
   0xc   :  { %s1137_s17 = smov 0   ;;  %s1139_s18 = smov 0  }
   0xd   :  { %s1141_s19 = smov 0   ;;  %s1143_s20 = smov 0  }
   0xe   :  { %s1145_s21 = smov 0   ;;  %s1147_s22 = smov 0  }
   0xf   :  { %s1149_s23 = smov 0   ;;  %s1151_s24 = smov 0  }
  0x10   :  { %s1153_s25 = smov 0  }
  0x11 LB: > { %1582 = sst [smem:[#allocation15_spill]] %s1054_s15  ;;  %s1187_s26 = sadd.s32 4294967295, %s1094_s25   ;;  %s1094_s25 = sphi %s1153_s25, %s27_s25   ;;  %s1090_s24 = sphi %s1151_s24, %s1620_s24   ;;  %s1086_s23 = sphi %s1149_s23, %s1619_s23   ;;  %s1082_s22 = sphi %s1147_s22, %s1618_s22   ;;  %s1078_s21 = sphi %s1145_s21, %s1617_s21   ;;  %s1074_s20 = sphi %s1143_s20, %s1610_s20   ;;  %s1070_s19 = sphi %s1141_s19, %s1616_s19   ;;  %s1066_s18 = sphi %s1139_s18, %s1615_s18   ;;  %s1062_s17 = sphi %s1137_s17, %s1608_s17   ;;  %s1058_s16 = sphi %s1135_s16, %s1614_s16   ;;  %s1054_s15 = sphi %s1133_s15, %s1613_s15  }
  0x12   : > { %1583 = sst [smem:[#allocation16_spill]] %s1062_s17  ;;  %s1570_s27 = sadd.s32 4294967294, %s1094_s25  }
  0x13   : > { %1584 = sst [smem:[#allocation17_spill]] %s1074_s20  ;;  %s39_s28 = sadd.s32 1, %s1086_s23 }
  0x14   : > { %s46_s29 = sadd.s32 1, %s1090_s24  ;;  %p40_p0 = scmp.ge.s32.totalorder %s39_s28, 2 }
  0x15   : > { %s59_s30 = sadd.s32 1, %s1074_s20  ;;  %p66_p1 = scmp.ne.s32.totalorder %s1074_s20, %s1070_s19 }
  0x16   : > { %p67_p2 = scmp.eq.s32.totalorder %s1094_s25, 0  ;;  %s1622_s28 = smov (%p40_p0, %s39_s28), 0 }
  0x17   : > { %1585 = sst [smem:[#allocation18_spill]] %s1622_s28  ;;  %s1624_s29 = smov (!%p40_p0, %s46_s29), %s1090_s24 }
  0x18   : > { %s55_s5 = ssub.s32 %s1086_s23, %s1622_s28  ;;  %p1201_p3 = por %p67_p2, %p66_p1 }
  0x19   : > { %p48_p4 = scmp.ge.s32.totalorder %s1624_s29, 2  ;;  %p72_p5 = scmp.ne.s32.totalorder %s1070_s19, %s1066_s18 }
  0x1a   : > { %p73_p6 = scmp.eq.s32.totalorder %s1187_s26, 0  ;;  %s119_s7 = sadd.s32 1, %s1062_s17 }
  0x1b   : > { %s1626_s29 = smov (%p48_p4, %s1624_s29), 0  ;;  %p129_p8 = scmp.ne.s32.totalorder %s1062_s17, %s1058_s16 }
  0x1c   : > { %1587 = sst [smem:[#allocation19_spill]] %s1626_s29  ;;  %p1210_p7 = por %p73_p6, %p72_p5 }
  0x1d   : > { %s54_s9 = ssub.s32 %s1090_s24, %s1626_s29  ;;  %p130_p9 = scmp.eq.s32.totalorder %s1187_s26, 3 }
  0x1e   : > { %s1588_s8 = scalar_select %p1210_p7, 1, 0 }
  0x1f   : > { %s56_s10 = sor.u32 %s55_s5, %s54_s9  ;;  %p117_p10 = scmp.eq.s32.totalorder %s54_s9, 0 }
  0x20   : > { %p57_p11 = scmp.eq.s32.totalorder %s56_s10, 0  ;;  %p1219_p12 = por %p130_p9, %p129_p8 }
  0x21   : > { %s1224_s12 = scalar_select %p117_p10, %s1062_s17, %s119_s7  }
  0x22   : > { %s1589_s11 = scalar_select %p1219_p12, 1, 0 }
  0x23   : > { %1590 = sst [smem:[#allocation20_spill]] %s1224_s12  ;;  %p135_p13 = scmp.ne.s32.totalorder %s1058_s16, %s1054_s15 }
  0x24   : > { %s1227_s13 = scalar_select %p57_p11, %s1074_s20, %s59_s30  }
  0x25   : > { %p136_p0 = scmp.eq.s32.totalorder %s1570_s27, 3  ;;  %p739_p1 = scmp.lt.s32.totalorder %s1094_s25, 4 }
  0x26   : > { %1591 = sst [smem:[#allocation21_spill]] %s1227_s13  ;;  %s1239_s18 = sand.u32 1, %s1074_s20  }
  0x27   : > { %p1234_p2 = por %p136_p0, %p135_p13  ;;  %s687_s5 = sshll.u32 %s1239_s18, 5 }
  0x28   : > { %s688_s9 = sshll.u32 %s1090_s24, 3  ;;  %s216_s29 = scalar_lea.vmem [#allocation2], %s687_s5 }
  0x29   : > { %s1592_s14 = scalar_select %p1234_p2, 1, 0 }
  0x2a   : > { %s223_s10 = sadd.s32 %s1086_s23, %s688_s9  ;;  %s226_s7 = sshll.u32 %s216_s29, 4  ;;  %s1244_s7 = int_to_ptr.vmem [resolvable:$true] %s226_s7 }
  0x2b   : > { %1593 = sst [smem:[#allocation22_spill]] %s1592_s14  ;;  %s689_s28 = sshll.u32 %s223_s10, 7 }
  0x2c   : > { %s1594_s0 = sld [smem:[#allocation23_spill]]  ;;  %p1253_p4 = pnand %p739_p1, %p1201_p3 }
  0x2d   : > { %s213_s29 = scalar_lea.sflag [#allocation3], %s1239_s18 }
  0x2e   : > { %p850_p6 = pneg %p1253_p4 }
  0x32   : > { %s1249_s27 = scalar_lea.hbm %s1594_s0, %s689_s28  ;;  %s853_s13 = scalar_lea.hbm %s1594_s0, 2048 }
  0x33   : > { %s848_s5 = scalar_lea.hbm %s1249_s27, 512  ;;  %p854_p3 = scmp.lt.u32.totalorder %s1249_s27, %s1594_s0 }
  0x34   : > { %p849_p5 = scmp.ne.s32.totalorder %s1249_s27, %s848_s5  ;;  %p855_p10 = scmp.lt.u32.totalorder %s853_s13, %s848_s5 }
  0x35   : > { %p857_p13 = scmp.lt.u32.totalorder %s848_s5, %s1249_s27 }
  0x36   : > { %p851_p8 = pnand %p850_p6, %p849_p5  ;;  %p856_p11 = por %p855_p10, %p854_p3 }
  0x38   : > { %p852_p9 = pneg %p851_p8  ;;  %p858_p0 = por %p857_p13, %p856_p11 }
  0x3a   : > { %p859_p1 = pnand %p858_p0, %p852_p9 }
  0x3c   : > { %862 = shalt.err (!%p859_p1)
}
  0x3d   : > { %s863_s30 = scalar_lea.vmem %s1244_s7, 512  ;;  %s1096_s28 = smov [#allocation2]  }
  0x3e   : > { %p864_p5 = scmp.ne.s32.totalorder %s1244_s7, %s863_s30  ;;  %s868_s6 = sshll.u32 %s1096_s28, 4  ;;  %s869_s6 = int_to_ptr.vmem [resolvable:$false] %s868_s6 }
  0x3f   : > { %s870_s9 = scalar_lea.vmem %s869_s6, 1024  ;;  %p871_p12 = scmp.lt.s32.totalorder %s1244_s7, %s869_s6 }
  0x40   : > { %p866_p8 = pnand %p864_p5, %p850_p6  ;;  %p872_p3 = scmp.lt.s32.totalorder %s870_s9, %s863_s30 }
  0x42   : > { %p867_p2 = pneg %p866_p8  ;;  %p873_p10 = por %p872_p3, %p871_p12 }
  0x44   : > { %p874_p11 = pnand %p873_p10, %p867_p2 }
  0x46   : > { %877 = shalt.err (!%p874_p11)
}
  0x47   : > { %s1097_s5 = smov 256   ;;  %s1098_s13 = smov 128  }
  0x48   : > { %s1099_s10 = smov 8   ;;  %p693_p12 = scmp.ge.s32.totalorder %s1094_s25, 1 }
  0x49   : > { %725 = dma.hbm_to_vmem [thread:$0]  (!%p1253_p4), %s1249_s27, 512, %s1244_s7, %s213_s29, %s1097_s5, %s1098_s13, %s1099_s10  }
  0x4a   : > { %p256_p2 = scmp.lt.s32.totalorder %s1094_s25, 5  ;;  %s690_s30 = sshll.u32 %s1239_s18, 3 }
  0x4b   : > { %s691_s6 = sshll.u32 %s1090_s24, 1  ;;  %s240_s9 = scalar_lea.vmem [#allocation5], %s690_s30 }
  0x4c   : > { %p1288_p9 = pnand %p693_p12, %p256_p2  ;;  %s251_s0 = sshll.u32 %s240_s9, 4  ;;  %s1294_s0 = int_to_ptr.vmem [resolvable:$true] %s251_s0 }
  0x4d   : > { %s247_s12 = sadd.s32 %s1086_s23, %s691_s6  ;;  %s237_s2 = scalar_lea.sflag [#allocation6], %s1239_s18 }
  0x4e   : > { %s692_s17 = sshll.u32 %s247_s12, 7  ;;  %s883_s5 = scalar_lea.hbm %s1564_s1, 512 }
  0x4f   : > { %s249_s4 = scalar_lea.hbm %s1564_s1, %s692_s17 }
  0x50   : > { %s878_s27 = scalar_lea.hbm %s249_s4, 128  ;;  %p884_p5 = scmp.lt.u32.totalorder %s249_s4, %s1564_s1 }
  0x51   : > { %p879_p13 = scmp.ne.s32.totalorder %s249_s4, %s878_s27  ;;  %p885_p8 = scmp.lt.u32.totalorder %s883_s5, %s878_s27 }
  0x52   : > { %p887_p10 = scmp.lt.u32.totalorder %s878_s27, %s249_s4 }
  0x53   : > { %p881_p0 = pnand %p879_p13, %p850_p6  ;;  %p886_p3 = por %p885_p8, %p884_p5 }
  0x55   : > { %p882_p1 = pneg %p881_p0  ;;  %p888_p11 = por %p887_p10, %p886_p3 }
  0x57   : > { %p889_p12 = pnand %p888_p11, %p882_p1 }
  0x59   : > { %892 = shalt.err (!%p889_p12)
}
  0x5a   : > { %s893_s15 = scalar_lea.vmem %s1294_s0, 128  ;;  %s1100_s17 = smov [#allocation5]  }
  0x5b   : > { %p894_p2 = scmp.ne.s32.totalorder %s1294_s0, %s893_s15  ;;  %s898_s12 = sshll.u32 %s1100_s17, 4  ;;  %s899_s12 = int_to_ptr.vmem [resolvable:$false] %s898_s12 }
  0x5c   : > { %s900_s14 = scalar_lea.vmem %s899_s12, 256  ;;  %p901_p7 = scmp.lt.s32.totalorder %s1294_s0, %s899_s12 }
  0x5d   : > { %p896_p13 = pnand %p894_p2, %p850_p6  ;;  %p902_p5 = scmp.lt.s32.totalorder %s900_s14, %s893_s15 }
  0x5f   : > { %p897_p0 = pneg %p896_p13  ;;  %p903_p8 = por %p902_p5, %p901_p7 }
  0x61   : > { %p904_p3 = pnand %p903_p8, %p897_p0 }
  0x63   : > { %907 = shalt.err (!%p904_p3)
}
  0x64   : > { %728 = dma.hbm_to_vmem [thread:$0]  (!%p1253_p4), %s249_s4, 128, %s1294_s0, %s237_s2  }
  0x65   : > { %260 = sbr.rel (%p1288_p9) target bundleno = 250 (0xfa), region = 28  ;;  %s262_s18 = sand.u32 (!%p1288_p9), 1, %s1070_s19  }
  0x66   : > { %s694_s30 = sshll.u32 (!%p1288_p9), %s262_s18, 5  ;;  %s263_s6 = scalar_lea.sflag (!%p1288_p9), [#allocation3], %s262_s18 }
  0x67   : > { %s266_s9 = scalar_lea.vmem (!%p1288_p9), [#allocation2], %s694_s30  ;;  %p1597_p6 = scmp.ne.s32.totalorder (!%p1288_p9), %s1588_s8, 0 }
  0x6c   : > { %1037 = dma.done.wait (%p1597_p6), %s263_s6, 512  }
  0x6d   : > { %1039 = vsyncadd (%p1597_p6), %s263_s6, 4294966784  ;;  %s695_s27 = sshll.u32 %s262_s18, 3  ;;  %s272_s7 = scalar_lea.sflag [#allocation6], %s262_s18 }
  0x6e   : > { %s1325_s20 = scalar_lea.vmem [#allocation5], %s695_s27 }
  0x6f   : > { %1041 = dma.done.wait (%p1597_p6), %s272_s7, 128  }
  0x70   : > { %1043 = vsyncadd (%p1597_p6), %s272_s7, 4294967168  ;;  %s1332_s0 = sand.u32 1, %s1058_s16   ;;  %vm324_vm0 = vcmask 130048   ;;  %v319_v0 = vld [vmem:[%s266_s9] sm:$0xff]  ;;  %v320_v1 = vld [vmem:[%s266_s9 + $0x8] sm:$0xff]  ;;  %v1101_v36 = vmov 0.0  }
  0x71   : > { %s696_s2 = sshll.u32 %s1332_s0, 5  ;;  %s698_s4 = sshll.u32 %s1332_s0, 3  ;;  %v1336_v2 = vld [vmem:[%s266_s9 + $0x10] sm:$0xff]  ;;  %v1338_v3 = vld [vmem:[%s266_s9 + $0x18] sm:$0xff]  ;;  %v325_v4 = vsel %vm324_vm0, %v319_v0, -inf  ;;  %v326_v5 = vsel %vm324_vm0, %v320_v1, -inf }
  0x72   : > { %v327_v6 = vsel %vm324_vm0, %v1336_v2, -inf  ;;  %v328_v7 = vsel %vm324_vm0, %v1338_v3, -inf  ;;  %v329_v8 = vmax.f32 %v325_v4, %v326_v5  ;;  %v323_v31 = vld [vmem:[%s1325_s20] sm:$0xff]  ;;  %s1369_s8 = scalar_lea.vmem [#allocation7], %s696_s2  ;;  %s1373_s28 = scalar_lea.vmem [#allocation8], %s696_s2 }
  0x73   : > { %v330_v9 = vmax.f32 %v327_v6, %v328_v7  ;;  %vm358_vm1 = vcmp.eq.s32.totalorder %v323_v31, 0  ;;  %vm366_vm2 = vcmp.eq.s32.totalorder %v323_v31, 1  ;;  %vm375_vm3 = vcmp.eq.s32.totalorder %v323_v31, 2  ;;  %s1377_s29 = scalar_lea.vmem [#allocation10], %s698_s4  ;;  %p699_p7 = scmp.ne.s32.totalorder %s1078_s21, 0 }
  0x74   : > { %v362_v35 = vsel %vm358_vm1, %v319_v0, 0.0  ;;  %v364_v37 = vsel %vm358_vm1, 1.0, %v1101_v36  ;;  %v373_v38 = vsel %vm366_vm2, 1.0, %v1101_v36  ;;  %v382_v39 = vsel %vm375_vm3, 1.0, %v1101_v36 }
  0x75   : > { %v331_v10 = vmax.f32 %v329_v8, %v330_v9  ;;  %vm384_vm4 = vcmp.eq.s32.totalorder %v323_v31, 3  ;;  %v370_v45 = vsel %vm366_vm2, %v320_v1, %v362_v35 }
  0x76   : > { %v391_v46 = vsel %vm384_vm4, 1.0, %v1101_v36  ;;  %v379_v58 = vsel %vm375_vm3, %v1336_v2, %v370_v45 }
  0x77   : > { %v332_v11 = vsub.f32 %v319_v0, %v331_v10  ;;  %v333_v12 = vsub.f32 %v320_v1, %v331_v10  ;;  %v334_v13 = vsub.f32 %v1336_v2, %v331_v10  ;;  %v335_v14 = vsub.f32 %v1338_v3, %v331_v10 }
  0x78   : > { %v388_v61 = vsel %vm384_vm4, %v1338_v3, %v379_v58  ;;  %v1102_v2 = vmov (!%p699_p7), 0.0  }
  0x79   : > { %v336_v15 = vmul.f32 1.442695, %v332_v11  ;;  %v338_v16 = vmul.f32 1.442695, %v333_v12  ;;  %v340_v17 = vmul.f32 1.442695, %v334_v13 }
  0x7a   : > { %v342_v18 = vmul.f32 1.442695, %v335_v14  ;;  %403 = vst.msk [vmem:[%s1369_s8] sm:$0xff] (!%p699_p7), %vm324_vm0, %v1102_v2  ;;  %404 = vst.msk [vmem:[%s1369_s8 + $0x8] sm:$0xff] (!%p699_p7), %vm324_vm0, %v1102_v2 }
  0x7b   : > { %836 = vpow2.f32 %v336_v15  ;;  %405 = vst.msk [vmem:[%s1369_s8 + $0x10] sm:$0xff] (!%p699_p7), %vm324_vm0, %v1102_v2  ;;  %406 = vst.msk [vmem:[%s1369_s8 + $0x18] sm:$0xff] (!%p699_p7), %vm324_vm0, %v1102_v2 }
  0x7c   : > { %838 = vpow2.f32 %v338_v16  ;;  %407 = vst.msk [vmem:[%s1373_s28] sm:$0xff] (!%p699_p7), %vm324_vm0, %v1102_v2  ;;  %408 = vst.msk [vmem:[%s1373_s28 + $0x8] sm:$0xff] (!%p699_p7), %vm324_vm0, %v1102_v2 }
  0x7d   : > { %840 = vpow2.f32 %v340_v17  ;;  %409 = vst.msk [vmem:[%s1373_s28 + $0x10] sm:$0xff] (!%p699_p7), %vm324_vm0, %v1102_v2  ;;  %410 = vst.msk [vmem:[%s1373_s28 + $0x18] sm:$0xff] (!%p699_p7), %vm324_vm0, %v1102_v2 }
  0x7e   : > { %842 = vpow2.f32 %v342_v18  ;;  %411 = vst.msk [vmem:[%s1377_s29] sm:$0xff] (!%p699_p7), %vm324_vm0, %v1102_v2 }
  0x85   : > { %v837_v19 = vpop.eup %836 }
  0x86   : > { %v839_v20 = vpop.eup %838  ;;  %v344_v21 = vsel %vm324_vm0, %v837_v19, 0.0 }
  0x87   : > { %v841_v22 = vpop.eup %840  ;;  %v345_v23 = vsel %vm324_vm0, %v839_v20, 0.0 }
  0x88   : > { %v843_v24 = vpop.eup %842  ;;  %v346_v25 = vadd.f32 %v345_v23, %v344_v21  ;;  %v347_v26 = vsel %vm324_vm0, %v841_v22, 0.0 }
  0x89   : > { %v349_v27 = vsel %vm324_vm0, %v843_v24, 0.0 }
  0x8a   : > { %v348_v28 = vadd.f32 %v347_v26, %v346_v25 }
  0x8c   : > { %v350_v29 = vadd.f32 %v349_v27, %v348_v28 }
  0x8e   : > { %844 = vrcp.f32 %v350_v29 }
  0x8f   : > { %846 = vlog2.f32 %v350_v29 }
  0x98   : > { %v845_v30 = vpop.eup %844 }
  0x99   : > { %v352_v32 = vmul.f32 %v845_v30, %v350_v29  ;;  %v847_v40 = vpop.eup %846 }
  0x9a   : > { %v356_v51 = vmul.f32 0.6931472, %v847_v40 }
  0x9b   : > { %v353_v33 = vsub.f32 2.0, %v352_v32 }
  0x9c   : > { %v357_v59 = vadd.f32 %v356_v51, %v331_v10 }
  0x9d   : > { %v354_v34 = vmul.f32 %v845_v30, %v353_v33 }
  0x9e   : > { %v393_v63 = vsub.f32 %v357_v59, %v388_v61 }
  0x9f   : > { %v359_v41 = vmul.f32 %v837_v19, %v354_v34  ;;  %v367_v42 = vmul.f32 %v839_v20, %v354_v34  ;;  %v376_v43 = vmul.f32 %v841_v22, %v354_v34  ;;  %v385_v44 = vmul.f32 %v843_v24, %v354_v34 }
  0xa1   : > { %v360_v47 = vsel %vm358_vm1, %v359_v41, 0.0  ;;  %v365_v48 = vadd.f32 %v364_v37, %v359_v41  ;;  %v368_v49 = vsel %vm366_vm2, %v367_v42, 0.0  ;;  %v374_v50 = vadd.f32 %v373_v38, %v367_v42 }
  0xa2   : > { %v369_v52 = vadd.f32 %v368_v49, %v360_v47  ;;  %v377_v53 = vsel %vm375_vm3, %v376_v43, 0.0  ;;  %v383_v54 = vadd.f32 %v382_v39, %v376_v43  ;;  %v386_v55 = vsel %vm384_vm4, %v385_v44, 0.0 }
  0xa3   : > { %v392_v56 = vadd.f32 %v391_v46, %v385_v44 }
  0xa4   : > { %v378_v57 = vadd.f32 %v377_v53, %v369_v52 }
  0xa6   : > { %v387_v60 = vadd.f32 %v386_v55, %v378_v57 }
  0xa8   : > { %v394_v62 = vsub.f32 1.0, %v387_v60  ;;  %402 = sbr.rel (%p699_p7) target bundleno = 175 (0xaf), region = 40 }
  0xaa   : > { %v395_v0 = vmul.f32 %v394_v62, %v394_v62 }
  0xac   : > { %v396_v1 = vmul.f32 0.25, %v395_v0 }
  0xae   : > { %v397_v4 = vmul.f32 %v396_v1, %v393_v63 }
  0xaf PF: > { %v424_v3 = vld [vmem:[%s1373_s28] sm:$0xff]  ;;  %v425_v5 = vld [vmem:[%s1373_s28 + $0x8] sm:$0xff]  ;;  %v426_v6 = vld [vmem:[%s1373_s28 + $0x10] sm:$0xff]  ;;  %s444_s21 = sand.u32 1, %s1187_s26   ;;  %s710_s5 = sshll.u32 %s1082_s22, 9 }
  0xb0   : > { %v428_v7 = vadd.f32 %v424_v3, %v365_v48  ;;  %v429_v8 = vadd.f32 %v425_v5, %v374_v50  ;;  %v430_v9 = vadd.f32 %v426_v6, %v383_v54  ;;  %v427_v10 = vld [vmem:[%s1373_s28 + $0x18] sm:$0xff]  ;;  %v412_v11 = vld [vmem:[%s1369_s8] sm:$0xff]  ;;  %v413_v12 = vld [vmem:[%s1369_s8 + $0x8] sm:$0xff]  ;;  %s1412_s15 = scalar_lea.hbm %s1566_s3, %s710_s5  ;;  %s483_s17 = sshll.u32 %s1373_s28, 4  ;;  %s1427_s17 = int_to_ptr.vmem [resolvable:$true] %s483_s17 }
  0xb1   : > { %v431_v13 = vadd.f32 %v427_v10, %v392_v56  ;;  %v416_v14 = vadd.f32 %v412_v11, %v360_v47  ;;  %v417_v15 = vadd.f32 %v413_v12, %v368_v49  ;;  %v414_v16 = vld [vmem:[%s1369_s8 + $0x10] sm:$0xff]  ;;  %v415_v17 = vld [vmem:[%s1369_s8 + $0x18] sm:$0xff]  ;;  %v436_v18 = vld [vmem:[%s1377_s29] sm:$0xff]  ;;  %s1598_s18 = sld [smem:[#allocation24_spill]]  ;;  %s1442_s9 = scalar_lea.sflag [#allocation9], %s444_s21 }
  0xb2   : > { %432 = vst.msk [vmem:[%s1373_s28] sm:$0xff] %vm324_vm0, %v428_v7  ;;  %433 = vst.msk [vmem:[%s1373_s28 + $0x8] sm:$0xff] %vm324_vm0, %v429_v8  ;;  %v418_v19 = vadd.f32 %v414_v16, %v377_v53  ;;  %v419_v20 = vadd.f32 %v415_v17, %v386_v55  ;;  %v437_v21 = vadd.f32 %v436_v18, %v397_v4  ;;  %s908_s27 = scalar_lea.vmem %s1427_s17, 512  ;;  %p1600_p9 = scmp.ne.s32.totalorder %s1589_s11, 0 }
  0xb3   : > { %434 = vst.msk [vmem:[%s1373_s28 + $0x10] sm:$0xff] %vm324_vm0, %v430_v9  ;;  %435 = vst.msk [vmem:[%s1373_s28 + $0x18] sm:$0xff] %vm324_vm0, %v431_v13  ;;  %p909_p4 = scmp.ne.s32.totalorder %s1427_s17, %s908_s27  ;;  %s1103_s7 = smov [#allocation8]  }
  0xb4   : > { %420 = vst.msk [vmem:[%s1369_s8] sm:$0xff] %vm324_vm0, %v416_v14  ;;  %421 = vst.msk [vmem:[%s1369_s8 + $0x8] sm:$0xff] %vm324_vm0, %v417_v15  ;;  %s912_s20 = sshll.u32 %s1103_s7, 4  ;;  %s913_s20 = int_to_ptr.vmem [resolvable:$false] %s912_s20 }
  0xb5   : > { %422 = vst.msk [vmem:[%s1369_s8 + $0x10] sm:$0xff] %vm324_vm0, %v418_v19  ;;  %423 = vst.msk [vmem:[%s1369_s8 + $0x18] sm:$0xff] %vm324_vm0, %v419_v20  ;;  %p910_p1 = pnand %p909_p4, %p1600_p9  ;;  %s914_s2 = scalar_lea.vmem %s913_s20, 1024 }
  0xb6   : > { %438 = vst.msk [vmem:[%s1377_s29] sm:$0xff] %vm324_vm0, %v437_v21  ;;  %p915_p11 = scmp.lt.s32.totalorder %s1427_s17, %s913_s20  ;;  %p916_p12 = scmp.lt.s32.totalorder %s914_s2, %s908_s27 }
  0xb7   : > { %s1599_s30 = smov %s1598_s18  ;;  %s1432_s6 = scalar_lea.hbm %s1598_s18, %s710_s5 }
  0xb8   : > { %p911_p10 = pneg %p910_p1  ;;  %p917_p2 = por %p916_p12, %p915_p11 }
  0xba   : > { %p918_p13 = pnand %p917_p2, %p911_p10 }
  0xbc   : > { %921 = shalt.err (!%p918_p13)
}
  0xbd   : > { %s922_s26 = scalar_lea.hbm %s1412_s15, 512  ;;  %s926_s21 = scalar_lea.hbm %s1566_s3, 1024 }
  0xbe   : > { %p923_p0 = scmp.ne.s32.totalorder %s1412_s15, %s922_s26  ;;  %p927_p3 = scmp.lt.u32.totalorder %s1412_s15, %s1566_s3 }
  0xbf   : > { %p928_p6 = scmp.lt.u32.totalorder %s926_s21, %s922_s26  ;;  %p930_p4 = scmp.lt.u32.totalorder %s922_s26, %s1412_s15 }
  0xc0   : > { %p924_p5 = pnand %p923_p0, %p1600_p9 }
  0xc1   : > { %p929_p7 = por %p928_p6, %p927_p3 }
  0xc2   : > { %p925_p8 = pneg %p924_p5 }
  0xc3   : > { %p931_p1 = por %p930_p4, %p929_p7 }
  0xc5   : > { %p932_p10 = pnand %p931_p1, %p925_p8 }
  0xc7   : > { %935 = shalt.err (!%p932_p10)
}
  0xc8   : > { %s1104_s10 = smov 128   ;;  %s1105_s12 = smov 8  }
  0xc9   : > { %717 = dma.vmem_to_hbm [thread:$0]  (%p1600_p9), %s1427_s17, 512, %s1412_s15, %s1442_s9, %s1104_s10, %s1104_s10, %s1105_s12  }
  0xca   : > { %s465_s14 = sshll.u32 %s1369_s8, 4  ;;  %s707_s18 = sshll.u32 %s1082_s22, 7  ;;  %s1471_s14 = int_to_ptr.vmem [resolvable:$true] %s465_s14 }
  0xcb   : > { %s1601_s20 = sld [smem:[#allocation25_spill]]  ;;  %s440_s4 = scalar_lea.sflag [#allocation4], %s1332_s0 }
  0xcc   : > { %s936_s28 = scalar_lea.vmem %s1471_s14, 512  ;;  %s1106_s21 = smov [#allocation7]  }
  0xcd   : > { %p937_p11 = scmp.ne.s32.totalorder %s1471_s14, %s936_s28  ;;  %s940_s15 = sshll.u32 %s1106_s21, 4  ;;  %s941_s15 = int_to_ptr.vmem [resolvable:$false] %s940_s15 }
  0xce   : > { %s942_s22 = scalar_lea.vmem %s941_s15, 1024  ;;  %p943_p13 = scmp.lt.s32.totalorder %s1471_s14, %s941_s15 }
  0xcf   : > { %p938_p12 = pnand %p937_p11, %p1600_p9  ;;  %p944_p0 = scmp.lt.s32.totalorder %s942_s22, %s936_s28 }
  0xd1   : > { %s1602_s2 = smov %s1601_s20  ;;  %s1476_s26 = scalar_lea.hbm %s1601_s20, %s707_s18 }
  0xd2   : > { %p939_p2 = pneg %p938_p12  ;;  %p945_p5 = por %p944_p0, %p943_p13 }
  0xd4   : > { %p946_p8 = pnand %p945_p5, %p939_p2 }
  0xd6   : > { %949 = shalt.err (!%p946_p8)
}
  0xd7   : > { %s950_s8 = scalar_lea.hbm %s1432_s6, 512  ;;  %s954_s13 = scalar_lea.hbm %s1599_s30, 1024 }
  0xd8   : > { %p951_p3 = scmp.ne.s32.totalorder %s1432_s6, %s950_s8  ;;  %p955_p4 = scmp.lt.u32.totalorder %s1432_s6, %s1599_s30 }
  0xd9   : > { %p956_p1 = scmp.lt.u32.totalorder %s954_s13, %s950_s8  ;;  %p958_p11 = scmp.lt.u32.totalorder %s950_s8, %s1432_s6 }
  0xda   : > { %p952_p6 = pnand %p951_p3, %p1600_p9 }
  0xdb   : > { %p957_p10 = por %p956_p1, %p955_p4 }
  0xdc   : > { %p953_p7 = pneg %p952_p6 }
  0xdd   : > { %p959_p12 = por %p958_p11, %p957_p10 }
  0xdf   : > { %p960_p2 = pnand %p959_p12, %p953_p7 }
  0xe1   : > { %963 = shalt.err (!%p960_p2)
}
  0xe2   : > { %716 = dma.vmem_to_hbm [thread:$0]  (%p1600_p9), %s1471_s14, 512, %s1432_s6, %s440_s4, %s1104_s10, %s1104_s10, %s1105_s12  }
  0xe3   : > { %s500_s7 = sshll.u32 %s1377_s29, 4  ;;  %s1107_s28 = smov [#allocation10]   ;;  %s501_s7 = int_to_ptr.vmem [resolvable:$true] %s500_s7 }
  0xe4   : > { %s964_s20 = scalar_lea.vmem %s501_s7, 128  ;;  %s968_s21 = sshll.u32 %s1107_s28, 4  ;;  %s969_s21 = int_to_ptr.vmem [resolvable:$false] %s968_s21 }
  0xe5   : > { %p965_p13 = scmp.ne.s32.totalorder %s501_s7, %s964_s20  ;;  %s970_s15 = scalar_lea.vmem %s969_s21, 256 }
  0xe6   : > { %p971_p8 = scmp.lt.s32.totalorder %s501_s7, %s969_s21  ;;  %p972_p3 = scmp.lt.s32.totalorder %s970_s15, %s964_s20 }
  0xe7   : > { %p966_p0 = pnand %p965_p13, %p1600_p9 }
  0xe8   : > { %p973_p6 = por %p972_p3, %p971_p8 }
  0xe9   : > { %p967_p5 = pneg %p966_p0 }
  0xeb   : > { %p974_p7 = pnand %p973_p6, %p967_p5 }
  0xed   : > { %977 = shalt.err (!%p974_p7)
}
  0xee   : > { %s978_s0 = scalar_lea.hbm %s1476_s26, 128  ;;  %s982_s10 = scalar_lea.hbm %s1602_s2, 256 }
  0xef   : > { %p979_p4 = scmp.ne.s32.totalorder %s1476_s26, %s978_s0  ;;  %p983_p11 = scmp.lt.u32.totalorder %s1476_s26, %s1602_s2 }
  0xf0   : > { %p984_p12 = scmp.lt.u32.totalorder %s982_s10, %s978_s0  ;;  %p986_p13 = scmp.lt.u32.totalorder %s978_s0, %s1476_s26 }
  0xf1   : > { %p980_p1 = pnand %p979_p4, %p1600_p9 }
  0xf2   : > { %p985_p2 = por %p984_p12, %p983_p11 }
  0xf3   : > { %p981_p10 = pneg %p980_p1 }
  0xf4   : > { %p987_p0 = por %p986_p13, %p985_p2 }
  0xf6   : > { %p988_p5 = pnand %p987_p0, %p981_p10 }
  0xf8   : > { %991 = shalt.err (!%p988_p5)
}
  0xf9   : > { %718 = dma.vmem_to_hbm [thread:$0]  (%p1600_p9), %s501_s7, 128, %s1476_s26, %s1442_s9  }
  0xfa PF: > { %s1603_s4 = sld [smem:[#allocation15_spill]]  ;;  %s1604_s22 = sld [smem:[#allocation22_spill]] }
  0xfb   : > { %p740_p8 = scmp.ge.s32.totalorder %s1094_s25, 2 }
 0x100   : > { %s512_s8 = sand.u32 1, %s1603_s4   ;;  %p1605_p3 = scmp.ne.s32.totalorder %s1604_s22, 0 }
 0x101   : > { %s513_s17 = scalar_lea.sflag [#allocation4], %s512_s8 }
 0x102   : > { %p730_p6 = pnand %p740_p8, %p1605_p3 }
 0x104   : > { %1045 = dma.done.wait (!%p730_p6), %s513_s17, 512  }
 0x105   : > { %1047 = vsyncadd (!%p730_p6), %s513_s17, 4294966784  ;;  %s1606_s5 = sadd.s32 4294967294, %s1094_s25  }
 0x106   : > { %s521_s13 = sand.u32 1, %s1606_s5  }
 0x107   : > { %s522_s18 = scalar_lea.sflag [#allocation9], %s521_s13 }
 0x108   : > { %1049 = dma.done.wait (!%p730_p6), %s522_s18, 640  }
 0x109   : > { %1051 = vsyncadd (!%p730_p6), %s522_s18, 4294966656  ;;  %s27_s25 = sadd.s32 1, %s1094_s25   ;;  %s1607_s11 = sld [smem:[#allocation16_spill]] }
 0x10a   : > { %p24_p9 = scmp.ge.s32.totalorder %s27_s25, 6   ;;  %s1608_s17 = sld [smem:[#allocation20_spill]] }
 0x10b   : > { %s1609_s9 = sld [smem:[#allocation17_spill]]  ;;  %s1610_s20 = sld [smem:[#allocation21_spill]] }
 0x10c   : > { %s1611_s26 = sld [smem:[#allocation18_spill]]  ;;  %s1612_s27 = sld [smem:[#allocation19_spill]] }
 0x10d   : > { %s1613_s15 = smov %s1058_s16  ;;  %s1615_s18 = smov %s1070_s19 }
 0x10e   : > { %s1617_s21 = smov %s1086_s23  ;;  %s1618_s22 = smov %s1090_s24 }
 0x10f   : > { %s1614_s16 = smov %s1607_s11  ;;  %26 = sbr.rel (!%p24_p9) target bundleno = 17 (0x11), region = 122 }
 0x111   : > { %s1616_s19 = smov %s1609_s9 }
 0x112   : > { %s1619_s23 = smov %s1611_s26  ;;  %s1620_s24 = smov %s1612_s27 }
 0x116   :  { %536 = vsyncpa [#allocation3], 1 }
 0x117   :  { %538 = vsyncpa [#allocation3 + $0x1], 1 }
 0x118   :  { %539 = vsyncpa [#allocation6], 1 }
 0x119   :  { %541 = vsyncpa [#allocation6 + $0x1], 1 }
 0x11a   :  { %542 = vsyncpa [#allocation4], 1 }
 0x11b   :  { %544 = vsyncpa [#allocation4 + $0x1], 1 }
 0x11c   :  { %545 = vsyncpa [#allocation9], 1 }
 0x11d   :  { %547 = vsyncpa [#allocation9 + $0x1], 1 }

</bundles_post_ra>
